<compile_context>
chip_gen: v6e
topology: v6e:2x2x1
jax: 0.10.0
libtpu: 0.0.40
codegen_flags: <defaults>
</compile_context>

<pallas_src>
import functools

import jax
import jax.numpy as jnp
import numpy as np
from jax.experimental import pallas as pl
from jax.experimental.pallas import tpu as pltpu

IGNORE_INDEX = 255


def _stats_kernel(logits_ref, label_ref, prob_ref, part_ref, *, threshold, hw):
    # logits_ref: (C, T) any float dtype ; label_ref: (1, T) any int dtype
    # prob_ref:   (1, T) f32 ; part_ref: (2, 128) f32  [row 0: sum, row 1: count]
    t = pl.program_id(1)
    tile = logits_ref.shape[-1]

    logits = logits_ref[...].astype(jnp.float32)               # (C, T)
    label = label_ref[...].astype(jnp.int32)                   # (1, T)

    # Lane-validity mask for the (possibly padded) last pixel tile.  Padded
    # lanes hold unspecified data, so every use is masked with jnp.where
    # (select, not multiply) so NaN/Inf garbage cannot leak into the partials.
    lane = jax.lax.broadcasted_iota(jnp.int32, label.shape, 1)  # (1, T)
    in_bounds = (t * tile + lane) < hw

    ignore = jnp.logical_or(label == IGNORE_INDEX, jnp.logical_not(in_bounds))
    lab = jnp.where(ignore, 0, label)                           # (1, T)

    # log-softmax pieces over the class (sublane) axis, pixels stay on lanes.
    m = jnp.max(logits, axis=0, keepdims=True)                  # (1, T)
    z = logits - m                                              # (C, T)
    exp_z = jnp.exp(z)                                          # (C, T)
    denom = jnp.sum(exp_z, axis=0, keepdims=True)               # (1, T)

    c_iota = jax.lax.broadcasted_iota(jnp.int32, logits.shape, 0)
    onehot = (c_iota == lab).astype(jnp.float32)                # (C, T)
    true_z = jnp.sum(z * onehot, axis=0, keepdims=True)         # (1, T)
    true_exp = jnp.sum(exp_z * onehot, axis=0, keepdims=True)   # (1, T)

    # Reuse exp(z): softmax prob of the true class without a second exp.
    prob = jnp.where(ignore, 1.0, true_exp / denom)
    prob_ref[...] = prob

    nll = jnp.log(denom) - true_z                               # -log_softmax[true]

    # Fast-path partials: only non-ignored, in-bounds pixels with
    # prob <= threshold contribute (F.cross_entropy ignore_index semantics).
    keep = jnp.logical_and(prob <= threshold, jnp.logical_not(ignore))
    part_sum = jnp.sum(jnp.where(keep, nll, 0.0), axis=1, keepdims=True)   # (1,1)
    part_cnt = jnp.sum(keep.astype(jnp.float32), axis=1, keepdims=True)    # (1,1)
    # Single full-block store (avoids two masked sub-sublane stores).
    part_ref[...] = jnp.concatenate(
        [jnp.broadcast_to(part_sum, (1, 128)),
         jnp.broadcast_to(part_cnt, (1, 128))], axis=0)


def _pick_tile_hw(hw, c, n, itemsize, *, max_block_bytes=4 << 20, min_grid_steps=8):
    """Pixel-tile width: a multiple of 128, bounded by a per-block byte budget
    and by keeping >= min_grid_steps total grid steps (v7x megacore) when the
    spatial extent allows it.  No divisibility requirement on hw (cdiv grid +
    in-kernel masking handles the ragged last tile)."""
    cap_bytes = max(128, (max_block_bytes // (itemsize * c)) // 128 * 128)
    target_steps = max(1, -(-min_grid_steps // max(1, n)))      # ceil(min_steps / n)
    cap_steps = max(128, (hw // target_steps) // 128 * 128)
    hw_pad = -(-hw // 128) * 128
    return max(128, min(cap_bytes, cap_steps, hw_pad))


def ohem_cross_entropy_loss(logits_nchw, label_nhw, threshold, min_n):
    """OHEM cross-entropy, weight=None, reduction='mean', ignore_index=255."""
    N, C, H, W = logits_nchw.shape
    HW = H * W
    P = N * HW

    itemsize = jnp.dtype(logits_nchw.dtype).itemsize
    tile_hw = _pick_tile_hw(HW, C, N, itemsize)
    grid_t = pl.cdiv(HW, tile_hw)

    # Pure views — no transpose, no dtype cast, no extra HBM pass.  bf16 logits
    # and narrow integer labels pass through as-is; the kernel upcasts per tile
    # in VMEM, so HBM traffic stays at the inputs' native width.
    logits_r = logits_nchw.reshape(N, C, HW)
    label_r = label_nhw.reshape(N, 1, HW)

    kernel = functools.partial(_stats_kernel, threshold=float(threshold), hw=HW)

    prob, partials = pl.pallas_call(
        kernel,
        out_shape=(jax.ShapeDtypeStruct((N, 1, HW), jnp.float32),
                   jax.ShapeDtypeStruct((N, grid_t, 2, 128), jnp.float32)),
        grid_spec=pltpu.PrefetchScalarGridSpec(
            num_scalar_prefetch=0,
            grid=(N, grid_t),
            in_specs=[
                pl.BlockSpec((None, C, tile_hw), lambda n, t: (n, 0, t)),
                pl.BlockSpec((None, 1, tile_hw), lambda n, t: (n, 0, t)),
            ],
            out_specs=[
                pl.BlockSpec((None, 1, tile_hw), lambda n, t: (n, 0, t)),
                pl.BlockSpec((None, None, 2, 128), lambda n, t: (n, t, 0, 0)),
            ]),
        compiler_params=pltpu.CompilerParams(
            dimension_semantics=("parallel", "parallel"),
            # 2x double-buffered ~4 MiB logits blocks + elementwise temporaries;
            # 48 MiB fits v7x's 64 MiB physical VMEM and is far under v5e/v6e's 128 MiB.
            vmem_limit_bytes=48 * 1024 * 1024),
    )(logits_r, label_r)

    # Tiny reduction over the per-tile partials (plain JAX, negligible traffic).
    sum_fast = jnp.sum(partials[:, :, 0, 0])
    cnt_fast = jnp.sum(partials[:, :, 1, 0])

    prob_flat = prob.reshape(P)
    valid_flat = label_nhw.reshape(P) != IGNORE_INDEX

    def _fast_path(_):
        # Common case: enough hard pixels under the user threshold.
        # NaN when cnt_fast == 0 (only possible with min_n == 0) — matches PyTorch.
        return sum_fast / cnt_fast

    def _fallback(_):
        # Rare path: use the min_n-th smallest true-class probability as the
        # threshold.  Selection / top-k has no clean Pallas equivalent.
        kth = -jax.lax.top_k(-prob_flat, min_n)[0][-1]
        keep = jnp.logical_and(prob_flat <= kth, valid_flat).astype(jnp.float32)
        nll = -jnp.log(jnp.maximum(prob_flat, jnp.finfo(jnp.float32).tiny))
        return jnp.sum(nll * keep) / jnp.sum(keep)

    return jax.lax.cond(cnt_fast >= jnp.float32(min_n), _fast_path, _fallback, None)


def ohem_ce_reference(logits, label, threshold, min_n, ignore_index=IGNORE_INDEX):
    """Pure-JAX reference replicating the PyTorch forward semantics."""
    N, C, H, W = logits.shape
    P = N * H * W
    logits_pc = jnp.transpose(logits, (0, 2, 3, 1)).reshape(P, C).astype(jnp.float32)
    lab = label.reshape(P).astype(jnp.int32)
    ignore = lab == ignore_index
    valid = jnp.logical_not(ignore)
    lab0 = jnp.where(ignore, 0, lab)
    logp = jax.nn.log_softmax(logits_pc, axis=1)
    true_logp = jnp.take_along_axis(logp, lab0[:, None], axis=1)[:, 0]
    prob = jnp.where(ignore, 1.0, jnp.exp(true_logp))
    count = jnp.sum(jnp.logical_and(prob <= threshold, valid).astype(jnp.float32))
    kth = -jax.lax.top_k(-prob, min_n)[0][-1]
    thr = jnp.where(count >= min_n, jnp.float32(threshold), kth)
    keep = jnp.logical_and(prob <= thr, valid).astype(jnp.float32)
    nll = -true_logp
    return jnp.sum(nll * keep) / jnp.sum(keep)


if __name__ == "__main__":
    # Small shapes consistent with the module's NCHW logits + NHW label.
    N, C, H, W = 2, 4, 16, 16
    threshold = 0.7
    min_n = 100

    key = jax.random.PRNGKey(0)
    k_logits, k_label, k_ignore = jax.random.split(key, 3)
    logits = jax.random.normal(k_logits, (N, C, H, W), dtype=jnp.float32)
    label = jax.random.randint(k_label, (N, H, W), 0, C, dtype=jnp.int32)
    ignore_mask = jax.random.bernoulli(k_ignore, 0.1, (N, H, W))
    label = jnp.where(ignore_mask, IGNORE_INDEX, label)

    loss_fn = jax.jit(
        lambda lg, lb: ohem_cross_entropy_loss(lg, lb, threshold, min_n))
    loss = jax.block_until_ready(loss_fn(logits, label))

    loss_ref = jax.block_until_ready(
        ohem_ce_reference(logits, label, threshold, min_n))

    np.testing.assert_allclose(np.asarray(loss), np.asarray(loss_ref),
                               rtol=1e-4, atol=1e-5)
    print("KERNEL_OK")
</pallas_src>

<mosaic_0001>
module attributes {stable_mosaic.version = 11 : i64} {
  func.func @_stats_kernel(%arg0: i32, %arg1: i32, %arg2: memref<1x4x128xf32, #tpu.memory_space<vmem>>, %arg3: memref<1x1x128xi32, #tpu.memory_space<vmem>>, %arg4: memref<1x1x128xf32, #tpu.memory_space<vmem>>, %arg5: memref<1x1x2x128xf32, #tpu.memory_space<vmem>>) attributes {dimension_semantics = [#tpu.dimension_semantics<parallel>, #tpu.dimension_semantics<parallel>], iteration_bounds = array<i64: 2, 2>, scalar_prefetch = 0 : i64, scratch_operands = 0 : i64, tpu.core_type = #tpu.core_type<tc>, window_params = [{transform_indices = @transform_0, window_bounds = array<i64: 1, 4, 128>}, {transform_indices = @transform_1, window_bounds = array<i64: 1, 1, 128>}, {transform_indices = @transform_2, window_bounds = array<i64: 1, 1, 128>}, {transform_indices = @transform_3, window_bounds = array<i64: 1, 1, 2, 128>}]} {
    %c0 = arith.constant 0 : index
    %c0_0 = arith.constant 0 : index
    %c0_1 = arith.constant 0 : index
    %0 = vector.load %arg2[%c0, %c0_0, %c0_1] : memref<1x4x128xf32, #tpu.memory_space<vmem>>, vector<1x4x128xf32>
    %1 = vector.shape_cast %0 : vector<1x4x128xf32> to vector<4x128xf32>
    %c0_2 = arith.constant 0 : index
    %c0_3 = arith.constant 0 : index
    %c0_4 = arith.constant 0 : index
    %2 = vector.load %arg3[%c0_2, %c0_3, %c0_4] : memref<1x1x128xi32, #tpu.memory_space<vmem>>, vector<1x1x128xi32>
    %3 = vector.shape_cast %2 : vector<1x1x128xi32> to vector<1x128xi32>
    %4 = tpu.iota {dimensions = array<i32: 1>} : vector<1x128xi32>
    %c128_i32 = arith.constant 128 : i32
    %5 = arith.muli %arg1, %c128_i32 : i32
    %6 = vector.broadcast %5 : i32 to vector<1x128xi32>
    %7 = arith.addi %6, %4 : vector<1x128xi32>
    %c256_i32 = arith.constant 256 : i32
    %8 = vector.broadcast %c256_i32 : i32 to vector<1x128xi32>
    %9 = arith.cmpi slt, %7, %8 : vector<1x128xi32>
    %c255_i32 = arith.constant 255 : i32
    %10 = vector.broadcast %c255_i32 : i32 to vector<1x128xi32>
    %11 = arith.cmpi eq, %3, %10 : vector<1x128xi32>
    %cst = arith.constant dense<true> : vector<1x128xi1>
    %12 = arith.xori %9, %cst : vector<1x128xi1>
    %13 = arith.ori %11, %12 : vector<1x128xi1>
    %c0_i32 = arith.constant 0 : i32
    %14 = vector.broadcast %c0_i32 : i32 to vector<1x128xi32>
    %15 = arith.select %13, %14, %3 : vector<1x128xi1>, vector<1x128xi32>
    %cst_5 = arith.constant dense<0xFF800000> : vector<128xf32>
    %16 = vector.multi_reduction <maximumf>, %1, %cst_5 [0] : vector<4x128xf32> to vector<128xf32>
    %17 = vector.shape_cast %16 : vector<128xf32> to vector<1x128xf32>
    %18 = vector.broadcast %17 : vector<1x128xf32> to vector<4x128xf32>
    %19 = arith.subf %1, %18 : vector<4x128xf32>
    %20 = math.exp %19 : vector<4x128xf32>
    %cst_6 = arith.constant dense<0.000000e+00> : vector<128xf32>
    %21 = vector.multi_reduction <add>, %20, %cst_6 [0] : vector<4x128xf32> to vector<128xf32>
    %22 = vector.shape_cast %21 : vector<128xf32> to vector<1x128xf32>
    %23 = tpu.iota {dimensions = array<i32: 0>} : vector<4x128xi32>
    %24 = vector.broadcast %15 : vector<1x128xi32> to vector<4x128xi32>
    %25 = arith.cmpi eq, %23, %24 : vector<4x128xi32>
    %26 = arith.extui %25 : vector<4x128xi1> to vector<4x128xi32>
    %27 = arith.sitofp %26 : vector<4x128xi32> to vector<4x128xf32>
    %28 = arith.mulf %19, %27 : vector<4x128xf32>
    %cst_7 = arith.constant dense<0.000000e+00> : vector<128xf32>
    %29 = vector.multi_reduction <add>, %28, %cst_7 [0] : vector<4x128xf32> to vector<128xf32>
    %30 = vector.shape_cast %29 : vector<128xf32> to vector<1x128xf32>
    %31 = arith.mulf %20, %27 : vector<4x128xf32>
    %cst_8 = arith.constant dense<0.000000e+00> : vector<128xf32>
    %32 = vector.multi_reduction <add>, %31, %cst_8 [0] : vector<4x128xf32> to vector<128xf32>
    %33 = vector.shape_cast %32 : vector<128xf32> to vector<1x128xf32>
    %34 = arith.divf %33, %22 : vector<1x128xf32>
    %cst_9 = arith.constant 1.000000e+00 : f32
    %35 = vector.broadcast %cst_9 : f32 to vector<1x128xf32>
    %36 = arith.select %13, %35, %34 : vector<1x128xi1>, vector<1x128xf32>
    %c0_10 = arith.constant 0 : index
    %c0_11 = arith.constant 0 : index
    %c0_12 = arith.constant 0 : index
    %37 = vector.load %arg4[%c0_10, %c0_11, %c0_12] : memref<1x1x128xf32, #tpu.memory_space<vmem>>, vector<1x1x128xf32>
    %38 = vector.shape_cast %37 : vector<1x1x128xf32> to vector<1x128xf32>
    %39 = vector.shape_cast %36 : vector<1x128xf32> to vector<1x1x128xf32>
    tpu.vector_store %arg4[%c0_10, %c0_11, %c0_12], %39 {strides = array<i32>} : memref<1x1x128xf32, #tpu.memory_space<vmem>>, vector<1x1x128xf32>,
    %40 = math.log %22 : vector<1x128xf32>
    %41 = arith.subf %40, %30 : vector<1x128xf32>
    %cst_13 = arith.constant 0.699999988 : f32
    %42 = vector.broadcast %cst_13 : f32 to vector<1x128xf32>
    %43 = arith.cmpf ole, %36, %42 : vector<1x128xf32>
    %cst_14 = arith.constant dense<true> : vector<1x128xi1>
    %44 = arith.xori %13, %cst_14 : vector<1x128xi1>
    %45 = arith.andi %43, %44 : vector<1x128xi1>
    %cst_15 = arith.constant 0.000000e+00 : f32
    %46 = vector.broadcast %cst_15 : f32 to vector<1x128xf32>
    %47 = arith.select %45, %41, %46 : vector<1x128xi1>, vector<1x128xf32>
    %cst_16 = arith.constant dense<0.000000e+00> : vector<1xf32>
    %48 = vector.multi_reduction <add>, %47, %cst_16 [1] : vector<1x128xf32> to vector<1xf32>
    %49 = vector.shape_cast %48 : vector<1xf32> to vector<1x1xf32>
    %50 = arith.extui %45 : vector<1x128xi1> to vector<1x128xi32>
    %51 = arith.sitofp %50 : vector<1x128xi32> to vector<1x128xf32>
    %cst_17 = arith.constant dense<0.000000e+00> : vector<1xf32>
    %52 = vector.multi_reduction <add>, %51, %cst_17 [1] : vector<1x128xf32> to vector<1xf32>
    %53 = vector.shape_cast %52 : vector<1xf32> to vector<1x1xf32>
    %54 = vector.shape_cast %49 : vector<1x1xf32> to vector<1x1xf32>
    %55 = vector.broadcast %54 : vector<1x1xf32> to vector<1x128xf32>
    %56 = vector.shape_cast %53 : vector<1x1xf32> to vector<1x1xf32>
    %57 = vector.broadcast %56 : vector<1x1xf32> to vector<1x128xf32>
    %58 = tpu.concatenate %55, %57 in 0 : vector<1x128xf32>, vector<1x128xf32> -> vector<2x128xf32>
    %c0_18 = arith.constant 0 : index
    %c0_19 = arith.constant 0 : index
    %c0_20 = arith.constant 0 : index
    %c0_21 = arith.constant 0 : index
    %59 = vector.load %arg5[%c0_18, %c0_19, %c0_20, %c0_21] : memref<1x1x2x128xf32, #tpu.memory_space<vmem>>, vector<1x1x2x128xf32>
    %60 = vector.shape_cast %59 : vector<1x1x2x128xf32> to vector<2x128xf32>
    %61 = vector.shape_cast %58 : vector<2x128xf32> to vector<1x1x2x128xf32>
    tpu.vector_store %arg5[%c0_18, %c0_19, %c0_20, %c0_21], %61 {strides = array<i32>} : memref<1x1x2x128xf32, #tpu.memory_space<vmem>>, vector<1x1x2x128xf32>,
    return
  }
  func.func @transform_0(%arg0: i32, %arg1: i32) -> (i32, i32, i32) {
    %c0_i32 = arith.constant 0 : i32
    %c0_i32_0 = arith.constant 0 : i32
    return %arg0, %c0_i32, %arg1 : i32, i32, i32
  }
  func.func @transform_1(%arg0: i32, %arg1: i32) -> (i32, i32, i32) {
    %c0_i32 = arith.constant 0 : i32
    %c0_i32_0 = arith.constant 0 : i32
    return %arg0, %c0_i32, %arg1 : i32, i32, i32
  }
  func.func @transform_2(%arg0: i32, %arg1: i32) -> (i32, i32, i32) {
    %c0_i32 = arith.constant 0 : i32
    %c0_i32_0 = arith.constant 0 : i32
    return %arg0, %c0_i32, %arg1 : i32, i32, i32
  }
  func.func @transform_3(%arg0: i32, %arg1: i32) -> (i32, i32, i32, i32) {
    %c0_i32 = arith.constant 0 : i32
    %c0_i32_0 = arith.constant 0 : i32
    %c0_i32_1 = arith.constant 0 : i32
    return %arg0, %arg1, %c0_i32, %c0_i32_0 : i32, i32, i32, i32
  }
}

</mosaic_0001>

<bundles_post_ra>
// kernel: neg.7
= control target key start
LH: loop header
LB: loop body
LE: loop exit
PB: predicated region body
PF: predicated region fallthrough
CT: control target
= control target key end

     0   :  { %s72_s0 = inlined_call_operand.vmem [shape: f32[2,1,256], index: 0, kind: input, shape index: {}]   ;;  %s73_s1 = inlined_call_operand.vmem [shape: f32[2,1,256], index: 1, kind: output, shape index: {}]  }
   0x1   :  { %v2_v0 = vld [vmem:[%s72_s0] sm:$0x1]  ;;  %v32_v1 = vld [vmem:[%s72_s0 + $0x2] sm:$0x1]  ;;  %v34_v2 = vld [vmem:[%s72_s0 + $0x1] sm:$0x1] }
   0x2   :  { %v5_v3 = vxor.u32 2147483648, %v2_v0  ;;  %v12_v4 = vxor.u32 2147483648, %v32_v1  ;;  %v20_v5 = vxor.u32 2147483648, %v34_v2  ;;  %v36_v6 = vld [vmem:[%s72_s0 + $0x3] sm:$0x1] }
   0x3   :  { %v28_v7 = vxor.u32 2147483648, %v36_v6 }
   0x4   :  { %7 = vst [vmem:[%s73_s1] sm:$0x1] %v5_v3  ;;  %33 = vst [vmem:[%s73_s1 + $0x2] sm:$0x1] %v12_v4 }
   0x5   :  { %35 = vst [vmem:[%s73_s1 + $0x1] sm:$0x1] %v20_v5  ;;  %37 = vst [vmem:[%s73_s1 + $0x3] sm:$0x1] %v28_v7 }

// kernel: _lambda_.1
= control target key start
LH: loop header
LB: loop body
LE: loop exit
PB: predicated region body
PF: predicated region fallthrough
CT: control target
= control target key end

     0   :  { %s597_s12 = smov 0   ;;  %s599_s13 = smov 0   ;;  %s681_s0 = inlined_call_operand.vmem [shape: f32[2,4,256], index: 0, kind: input, shape index: {}]   ;;  %s682_s1 = inlined_call_operand.vmem [shape: s32[2,1,256], index: 1, kind: input, shape index: {}]   ;;  %s683_s2 = inlined_call_operand.vmem [shape: f32[2,1,256], index: 2, kind: output, shape index: {0}]   ;;  %s684_s3 = inlined_call_operand.vmem [shape: f32[2,2,2,128], index: 3, kind: output, shape index: {1}]  }
   0x1   :  { %s601_s14 = smov 0   ;;  %s603_s15 = smov 0  }
   0x2   :  { %s605_s16 = smov 0  }
   0x3 LB: > { %s23_s17 = sadd.s32 1, %s565_s14  ;;  %s26_s18 = sadd.s32 1, %s569_s15  ;;  %s573_s16 = sphi %s605_s16, %s14_s16   ;;  %s569_s15 = sphi %s603_s15, %s690_s15   ;;  %s565_s14 = sphi %s601_s14, %s689_s14   ;;  %s561_s13 = sphi %s599_s13, %s688_s13   ;;  %s557_s12 = sphi %s597_s12, %s687_s12  }
   0x4   : > { %p24_p0 = scmp.ge.s32.totalorder %s23_s17, 2  ;;  %p475_p1 = scmp.ge.s32.totalorder %s573_s16, 1 }
   0x5   : > { %p175_p2 = scmp.lt.s32.totalorder %s573_s16, 5 }
   0x6   : > { %s692_s17 = smov (%p24_p0, %s23_s17), 0  ;;  %s694_s18 = smov (!%p24_p0, %s26_s18), %s569_s15 }
   0x7   : > { %p176_p3 = pnand %p475_p1, %p175_p2  ;;  %p28_p4 = scmp.ge.s32.totalorder %s694_s18, 2 }
   0x8   : > { %p219_p5 = scmp.lt.s32.totalorder (!%p176_p3), %s561_s13, 1  ;;  %p221_p6 = scmp.lt.s32.totalorder (!%p176_p3), %s557_s12, 1 }
   0x9   : > { %s696_s18 = smov (%p28_p4, %s694_s18), 0  ;;  %179 = sbr.rel (%p176_p3) target bundleno = 230 (0xe6), region = 28 }
   0xa   : > { %s482_s26 = sshll.u32 (!%p176_p3), %s557_s12, 7 }
   0xe   : > { %s698_s13 = smov (!%p219_p5, %s561_s13), 1  ;;  %v251_v0 = vlaneseq  ;;  %vm261_vm0 = vcmask 1043456   ;;  %v254_v5 = vstv %s482_s26  ;;  %vm575_vm3 = vmmov 1  }
   0xf   : > { %s222_s19 = scalar_select %p221_p6, %s557_s12, 1  ;;  %v576_v20 = vmov 0.0   ;;  %vm315_vm9 = vcmask 1040384  }
  0x10   : > { %s476_s20 = sshll.u32 %s698_s13, 1  ;;  %v252_v3 = vand.u32 127, %v251_v0  ;;  %v280_v14 = vshrl.u32 %v251_v0, 7 }
  0x11   : > { %s631_s21 = sadd.s32 %s476_s20, %s222_s19 }
  0x12   : > { %s477_s22 = sshll.u32 %s631_s21, 2  ;;  %v255_v7 = vadd.s32 %v254_v5, %v252_v3  ;;  %s233_s29 = scalar_lea.vmem %s682_s1, %s631_s21  ;;  %v283_v17 = vsub.s32 0, %v280_v14 }
  0x13   : > { %s226_s25 = scalar_lea.vmem %s681_s0, %s477_s22  ;;  %v250_v10 = vld [vmem:[%s233_s29] sm:$0x1]  ;;  %s240_s5 = scalar_lea.vmem %s683_s2, %s631_s21 }
  0x14   : > { %v249_v1 = vld [vmem:[%s226_s25] sm:$0xf]  ;;  %vm256_vm1 = vcmp.lt.s32.totalorder %v255_v7, 256  ;;  %vm257_vm2 = vcmp.eq.s32.totalorder %v250_v10, 255  ;;  %s481_s6 = sshll.u32 %s631_s21, 1 }
  0x15   : > { %v262_v2 = vsel %vm261_vm0, %v249_v1, -inf  ;;  %vm258_vm4 = vmxor %vm256_vm1, %vm575_vm3  ;;  %s248_s9 = scalar_lea.vmem %s684_s3, %s481_s6 }
  0x16   : > { %v263_v4 = vrot.slane %v262_v2, 4  ;;  %vm644_vm5 = vmor %vm257_vm2, %vm258_vm4 }
  0x17   : > { %v260_v18 = vsel %vm644_vm5, 0, %v250_v10  ;;  %vm312_vm7 = vmxor %vm644_vm5, %vm575_vm3 }
  0x18   : > { %v264_v6 = vmax.f32 %v262_v2, %v263_v4  ;;  %v284_v19 = vrot.slane %v260_v18, %v283_v17 }
  0x1a   : > { %v265_v8 = vrot.slane %v264_v6, 2  ;;  %vm285_vm6 = vcmp.eq.s32.totalorder %v280_v14, %v284_v19 }
  0x1b   : > { %v483_v21 = vsel %vm285_vm6, 1.0, %v576_v20 }
  0x1c   : > { %v266_v9 = vmax.f32 %v264_v6, %v265_v8 }
  0x1e   : > { %v267_v11 = vrot.slane %v266_v9, 1 }
  0x20   : > { %v268_v12 = vmax.f32 %v266_v9, %v267_v11 }
  0x22   : > { %v269_v13 = vsub.f32 %v249_v1, %v268_v12 }
  0x24   : > { %v270_v16 = vmul.f32 1.442695, %v269_v13  ;;  %v288_v23 = vmul.f32 %v483_v21, %v269_v13 }
  0x26   : > { %529 = vpow2.f32 %v270_v16  ;;  %v289_v29 = vsel %vm261_vm0, %v288_v23, 0.0 }
  0x27   : > { %v290_v32 = vrot.slane %v289_v29, 4 }
  0x29   : > { %v291_v36 = vadd.f32 %v290_v32, %v289_v29 }
  0x2b   : > { %v292_v39 = vrot.slane %v291_v36, 2 }
  0x2d   : > { %v293_v41 = vadd.f32 %v292_v39, %v291_v36 }
  0x2f   : > { %v294_v43 = vrot.slane %v293_v41, 1 }
  0x31   : > { %v295_v46 = vadd.f32 %v294_v43, %v293_v41 }
  0x33   : > { %v530_v22 = vpop.eup %529 }
  0x34   : > { %v272_v24 = vsel %vm261_vm0, %v530_v22, 0.0  ;;  %v296_v25 = vmul.f32 %v530_v22, %v483_v21 }
  0x35   : > { %v273_v26 = vrot.slane %v272_v24, 4 }
  0x36   : > { %v297_v27 = vsel %vm261_vm0, %v296_v25, 0.0 }
  0x37   : > { %v274_v28 = vadd.f32 %v273_v26, %v272_v24  ;;  %v298_v30 = vrot.slane %v297_v27, 4 }
  0x39   : > { %v275_v31 = vrot.slane %v274_v28, 2  ;;  %v299_v34 = vadd.f32 %v298_v30, %v297_v27 }
  0x3b   : > { %v276_v33 = vadd.f32 %v275_v31, %v274_v28  ;;  %v300_v38 = vrot.slane %v299_v34, 2 }
  0x3d   : > { %v277_v35 = vrot.slane %v276_v33, 1  ;;  %v301_v40 = vadd.f32 %v300_v38, %v299_v34 }
  0x3f   : > { %v278_v37 = vadd.f32 %v277_v35, %v276_v33  ;;  %v302_v42 = vrot.slane %v301_v40, 1 }
  0x41   : > { %531 = vrcp.f32 %v278_v37  ;;  %v303_v44 = vadd.f32 %v302_v42, %v301_v40 }
  0x42   : > { %533 = vlog2.f32 %v278_v37 }
  0x4e   : > { %v532_v45 = vpop.eup %531 }
  0x4f   : > { %v534_v47 = vpop.eup %533  ;;  %v305_v48 = vmul.f32 %v532_v45, %v303_v44 }
  0x50   : > { %v309_v49 = vmul.f32 0.6931472, %v534_v47 }
  0x51   : > { %v306_v50 = vsel %vm644_vm5, 1.0, %v305_v48 }
  0x52   : > { %vm311_vm8 = vcmp.le.f32.partialorder %v306_v50, 0.7  ;;  %307 = vst [vmem:[%s240_s5] sm:$0x1] %v306_v50  ;;  %v310_v51 = vsub.f32 %v309_v49, %v295_v46 }
  0x53   : > { %vm313_vm10 = vmand %vm311_vm8, %vm312_vm7 }
  0x54   : > { %v484_v52 = vsel %vm313_vm10, 1.0, %v576_v20  ;;  %v314_v53 = vsel %vm313_vm10, %v310_v51, 0.0 }
  0x55   : > { %v321_v54 = vsel %vm315_vm9, %v484_v52, 0.0  ;;  %v316_v55 = vsel %vm315_vm9, %v314_v53, 0.0 }
  0x56   : > { %322 = vadd.xlane.f32.xlu0 %v321_v54 }
  0x5a   : > { %317 = vadd.xlane.f32.xlu0 %v316_v55 }
  0xdf   : > { %v323_v56 = vpop.xlane.xlu0 %322 }
  0xe0   : > { %v325_v57 = vrot.slane %v323_v56, 7 }
  0xe3   : > { %v318_v58 = vpop.xlane.xlu0 %317 }
  0xe4   : > { %v327_v59 = vsel %vm315_vm9, %v318_v58, %v325_v57 }
  0xe5   : > { %328 = vst [vmem:[%s248_s9] sm:$0x3] %v327_v59 }
  0xe6 PF: > { %s14_s16 = sadd.s32 1, %s573_s16   ;;  %s687_s12 = smov %s565_s14 }
  0xe7   : > { %p11_p7 = scmp.ge.s32.totalorder %s14_s16, 6   ;;  %s688_s13 = smov %s569_s15 }
  0xe8   : > { %s689_s14 = smov %s692_s17  ;;  %s690_s15 = smov %s696_s18 }
  0xe9   :  { %13 = sbr.rel (!%p11_p7) target bundleno = 3 (0x3), region = 73 }

</bundles_post_ra>
